<compile_context>
chip_gen: v6e
topology: v6e:2x2x1
jax: 0.10.0
libtpu: 0.0.40
codegen_flags: <defaults>
</compile_context>

<pallas_src>
import functools

import jax
import jax.numpy as jnp
from jax.experimental import pallas as pl
from jax.experimental.pallas import tpu as pltpu


def _subword_kernel(win_ref, w_ref, out_ref, *, batch_block, l_out_p):
    """One batch block: conv as a single MXU matmul, then max over time.

    win_ref: (batch_block * l_out_p, K)  bf16   (K unpadded -> minimal HBM bytes)
    w_ref:   (K, Np)                     bf16   (same block every step -> resident)
    out_ref: (batch_block, Np)           f32
    """
    conv = jnp.dot(win_ref[...], w_ref[...],
                   preferred_element_type=jnp.float32)        # MXU, f32 accumulate
    # Free, tile-aligned view: l_out_p is a multiple of 8 (f32 sublane tile).
    conv = conv.reshape(batch_block, l_out_p, conv.shape[-1])
    out_ref[...] = jnp.max(conv, axis=1)                       # max over time


def _pick_batch_block(B, l_out_p, k, *, target_m=256, target_steps=8,
                      max_block_bytes=4 * 1024 * 1024):
    """Batch rows per grid step.

    - M = batch_block * l_out_p >= ~256 so the MXU sees full-height passes and the
      ~0.35us per-grid-step overhead is amortized.
    - For large batches keep ~target_steps (>= 8, even) grid steps so BlockSpec
      double-buffering overlaps the windows DMA with compute and v7x's two
      TensorCores each get >= 4 pipelined steps.
    - Cap the bf16 windows block at a few MiB so double-buffered blocks fit every
      generation's scoped VMEM (v5e 16 MiB default scoped, v7x 64 MiB physical).
    """
    tb = pl.cdiv(target_m, l_out_p)                 # M floor
    if B >= target_steps:
        tb = max(tb, B // target_steps)             # big tiles, ~target_steps steps
    tb_mem = max(1, max_block_bytes // (l_out_p * k * 2))
    return max(1, min(tb, tb_mem))


def subword_forward(x, weight, *, ngrams, input_dim, batch_block=None):
    """x: (B, 1, L) f32, weight: (outDim, 1, K) f32 (PyTorch Conv1d layout).

    Returns (B, 1, outDim): max over the time axis of conv1d(x, weight,
    stride=input_dim, bias=False) -- i.e. the PyTorch module's forward.
    """
    B, cin, L = x.shape
    assert cin == 1
    out_dim, _, K = weight.shape
    assert K == ngrams * input_dim
    L_out = (L - K) // input_dim + 1
    assert L_out > 0, "sequence too short for one conv window (L < ngrams*inputDim)"

    # Time padded to a multiple of 8 by replicating the last real window (exact
    # under max); output lanes padded to the minimal multiple of 128 only.
    L_out_p = -(-L_out // 8) * 8
    Np = max(128, -(-out_dim // 128) * 128)

    if batch_block is None:
        batch_block = _pick_batch_block(B, L_out_p, K)
    if batch_block < B:
        batch_block = -(-batch_block // 8) * 8      # tile-aligned multi-step blocks
    if batch_block >= B:
        batch_block = B                             # full-dim blocks are always legal
    nb = pl.cdiv(B, batch_block)
    Bp = nb * batch_block

    # --- wrapper glue: bf16 cast FIRST (halves later HBM passes), then ONE gather
    # doing im2col + time edge-pad + batch edge-pad straight into the 2-D
    # (Bp*L_out_p, K) layout the kernel wants.  No K padding in HBM.
    x_bf = x[:, 0, :].astype(jnp.bfloat16)                        # (B, L)
    t_idx = jnp.minimum(jnp.arange(L_out_p), L_out - 1)           # replicate last window
    pos = t_idx[:, None] * input_dim + jnp.arange(K)[None, :]     # (L_out_p, K)
    b_idx = jnp.minimum(jnp.arange(Bp), B - 1)                    # replicate last batch row
    windows = x_bf[b_idx[:, None, None], pos[None, :, :]]         # (Bp, L_out_p, K)
    windows = windows.reshape(Bp * L_out_p, K)                    # metadata-only

    w_bf = jnp.pad(weight[:, 0, :].astype(jnp.bfloat16).T,
                   ((0, 0), (0, Np - out_dim)))                   # (K, Np), zero cols

    m_step = batch_block * L_out_p
    kernel = functools.partial(_subword_kernel,
                               batch_block=batch_block, l_out_p=L_out_p)

    out = pl.pallas_call(
        kernel,
        out_shape=jax.ShapeDtypeStruct((Bp, Np), jnp.float32),
        grid_spec=pltpu.PrefetchScalarGridSpec(
            num_scalar_prefetch=0,
            grid=(nb,),
            in_specs=[
                # windows: last dim = full K (no 128-pad); second-minor m_step is a
                # multiple of 8 when nb > 1, or the full dim when nb == 1.
                pl.BlockSpec((m_step, K), lambda i: (i, 0)),
                # weight: same block every step -> resident in VMEM.
                pl.BlockSpec((K, Np), lambda i: (0, 0)),
            ],
            out_specs=pl.BlockSpec((batch_block, Np), lambda i: (i, 0)),
        ),
        compiler_params=pltpu.CompilerParams(
            dimension_semantics=("parallel",),       # megacore-shard batch blocks
            vmem_limit_bytes=32 * 1024 * 1024),      # explicit; safe on v5e/v6e/v7x
    )(windows, w_bf)

    out = out[:B, :out_dim]                           # strip batch/lane padding
    return out.reshape(B, 1, out_dim).astype(x.dtype)  # (B, 1, outDim)


def _reference(x, weight, *, input_dim, cast_bf16=False):
    """Pure-JAX reference of the PyTorch forward (conv1d + max over time)."""
    B, _, L = x.shape
    out_dim, _, K = weight.shape
    L_out = (L - K) // input_dim + 1
    x2 = x[:, 0, :]
    idx = jnp.arange(L_out)[:, None] * input_dim + jnp.arange(K)
    windows = x2[:, idx]                                          # (B, L_out, K)
    w = weight[:, 0, :]
    if cast_bf16:
        windows = windows.astype(jnp.bfloat16)
        w = w.astype(jnp.bfloat16)
    conv = jnp.einsum('btk,ok->bto', windows, w,
                      preferred_element_type=jnp.float32)         # (B, L_out, outDim)
    return jnp.max(conv, axis=1, keepdims=True).astype(x.dtype)   # (B, 1, outDim)


if __name__ == "__main__":
    def run_case(name, *, B, L, ngrams, input_dim, out_dim):
        K = ngrams * input_dim
        key = jax.random.PRNGKey(0)
        kx, kw = jax.random.split(key)
        x = jax.random.normal(kx, (B, 1, L), dtype=jnp.float32)
        # deterministic xavier_normal_ equivalent for Conv1d weight (outDim, 1, K):
        # fan_in = K, fan_out = outDim*K, std = sqrt(2 / (fan_in + fan_out))
        std = (2.0 / (K + out_dim * K)) ** 0.5
        weight = std * jax.random.normal(kw, (out_dim, 1, K), dtype=jnp.float32)

        out = subword_forward(x, weight, ngrams=ngrams, input_dim=input_dim)
        out = jax.block_until_ready(out)
        assert out.shape == (B, 1, out_dim), name

        # Tight check vs a reference using the same bf16 operands / f32 accumulation.
        ref_bf = _reference(x, weight, input_dim=input_dim, cast_bf16=True)
        assert jnp.allclose(out, ref_bf, atol=2e-3, rtol=2e-3), name
        # Loose check vs the pure-f32 reference (bf16 input-cast error only).
        ref_f32 = _reference(x, weight, input_dim=input_dim, cast_bf16=False)
        assert jnp.allclose(out, ref_f32, atol=3e-2, rtol=3e-2), name

    # Tiny shape (module defaults used before): single full-dim grid step.
    run_case("tiny", B=2, L=72, ngrams=2, input_dim=8, out_dim=128)
    # Moderate shape: 8 "parallel" pipelined grid steps (M=256 per step), time
    # padded 13 -> 16 by window replication, outDim 96 padded to 128 lanes.
    run_case("blocked", B=128, L=120, ngrams=3, input_dim=8, out_dim=96)

    print("KERNEL_OK")
</pallas_src>

<mosaic_0001>
module attributes {stable_mosaic.version = 11 : i64} {
  func.func @_subword_kernel(%arg0: i32, %arg1: memref<16x16xbf16, #tpu.memory_space<vmem>>, %arg2: memref<16x128xbf16, #tpu.memory_space<vmem>>, %arg3: memref<2x128xf32, #tpu.memory_space<vmem>>) attributes {dimension_semantics = [#tpu.dimension_semantics<parallel>], iteration_bounds = array<i64: 1>, scalar_prefetch = 0 : i64, scratch_operands = 0 : i64, tpu.core_type = #tpu.core_type<tc>, window_params = [{transform_indices = @transform_0, window_bounds = array<i64: 16, 16>}, {pipeline_mode = #tpu.pipeline_mode<synchronous>, transform_indices = @transform_1, window_bounds = array<i64: 16, 128>}, {transform_indices = @transform_2, window_bounds = array<i64: 2, 128>}]} {
    %c0 = arith.constant 0 : index
    %c0_0 = arith.constant 0 : index
    %0 = vector.load %arg1[%c0, %c0_0] : memref<16x16xbf16, #tpu.memory_space<vmem>>, vector<16x16xbf16>
    %c0_1 = arith.constant 0 : index
    %c0_2 = arith.constant 0 : index
    %1 = vector.load %arg2[%c0_1, %c0_2] : memref<16x128xbf16, #tpu.memory_space<vmem>>, vector<16x128xbf16>
    %cst = arith.constant dense<0.000000e+00> : vector<16x128xf32>
    %2 = tpu.matmul %0, %1, %cst {dimension_numbers = #tpu.dot_dimension_numbers<[1], [0], [0], [1], [0, 0, 1, 1], [], []>} : vector<16x16xbf16>, vector<16x128xbf16>, vector<16x128xf32> -> vector<16x128xf32>
    %3 = vector.shape_cast %2 : vector<16x128xf32> to vector<2x8x128xf32>
    %cst_3 = arith.constant dense<0xFF800000> : vector<2x128xf32>
    %4 = vector.multi_reduction <maximumf>, %3, %cst_3 [1] : vector<2x8x128xf32> to vector<2x128xf32>
    %c0_4 = arith.constant 0 : index
    %c0_5 = arith.constant 0 : index
    %5 = vector.load %arg3[%c0_4, %c0_5] : memref<2x128xf32, #tpu.memory_space<vmem>>, vector<2x128xf32>
    tpu.vector_store %arg3[%c0_4, %c0_5], %4 {strides = array<i32>} : memref<2x128xf32, #tpu.memory_space<vmem>>, vector<2x128xf32>,
    return
  }
  func.func @transform_0(%arg0: i32) -> (i32, i32) {
    %c0_i32 = arith.constant 0 : i32
    %c0_i32_0 = arith.constant 0 : i32
    return %arg0, %c0_i32 : i32, i32
  }
  func.func @transform_1(%arg0: i32) -> (i32, i32) {
    %c0_i32 = arith.constant 0 : i32
    %c0_i32_0 = arith.constant 0 : i32
    %c0_i32_1 = arith.constant 0 : i32
    return %c0_i32, %c0_i32_0 : i32, i32
  }
  func.func @transform_2(%arg0: i32) -> (i32, i32) {
    %c0_i32 = arith.constant 0 : i32
    %c0_i32_0 = arith.constant 0 : i32
    return %arg0, %c0_i32 : i32, i32
  }
}

</mosaic_0001>

<bundles_post_ra>
// kernel: tpu_custom_call.1
= control target key start
LH: loop header
LB: loop body
LE: loop exit
PB: predicated region body
PF: predicated region fallthrough
CT: control target
= control target key end

     0   :  { %7 = vsyncpa [#allocation3], 0  ;;  %s252_s0 = inlined_call_operand.hbm [shape: bf16[16,16], index: 0, kind: input, shape index: {}]   ;;  %s253_s1 = inlined_call_operand.hbm [shape: bf16[16,128], index: 1, kind: input, shape index: {}]   ;;  %s254_s2 = inlined_call_operand.hbm [shape: f32[2,128], index: 2, kind: output, shape index: {}]  }
   0x1   :  { %8 = vsyncpa [#allocation6], 0 }
   0x2   :  { %9 = vsyncpa [#allocation4], 0  ;;  %s221_s9 = smov [#allocation2]  }
   0x3   :  { %s15_s10 = sshll.u32 %s221_s9, 4  ;;  %s16_s10 = int_to_ptr.vmem [resolvable:$true] %s15_s10 }
   0x4   :  { %s163_s11 = scalar_lea.vmem %s16_s10, 128  ;;  %p168_p1 = scmp.lt.s32.totalorder %s16_s10, %s16_s10 }
   0x5   :  { %p164_p0 = scmp.ne.s32.totalorder %s16_s10, %s163_s11  ;;  %p169_p2 = scmp.lt.s32.totalorder %s163_s11, %s163_s11 }
   0x7   :  { %p170_p3 = por %p169_p2, %p168_p1 }
   0x9   :  { %p171_p4 = pnand %p170_p3, %p164_p0 }
   0xb   :  { %174 = shalt.err (!%p171_p4)
}
   0xc   :  { %s222_s12 = smov 64   ;;  %s223_s13 = smov 4  }
   0xd   :  { %21 = dma.hbm_to_vmem [thread:$0]  %s252_s0, 128, %s16_s10, [#allocation3], %s222_s12, %s222_s12, %s223_s13  }
   0xe   :  { %s224_s16 = smov [#allocation5]  }
   0xf   :  { %s27_s17 = sshll.u32 %s224_s16, 4  ;;  %s28_s17 = int_to_ptr.vmem [resolvable:$true] %s27_s17 }
  0x10   :  { %s183_s18 = scalar_lea.vmem %s28_s17, 128  ;;  %p188_p6 = scmp.lt.s32.totalorder %s28_s17, %s28_s17 }
  0x11   :  { %p184_p5 = scmp.ne.s32.totalorder %s28_s17, %s183_s18  ;;  %p189_p7 = scmp.lt.s32.totalorder %s183_s18, %s183_s18 }
  0x13   :  { %p190_p8 = por %p189_p7, %p188_p6 }
  0x15   :  { %p191_p9 = pnand %p190_p8, %p184_p5 }
  0x17   :  { %194 = shalt.err (!%p191_p9)
}
  0x18   :  { %33 = dma.hbm_to_vmem [thread:$0]  %s253_s1, 128, %s28_s17, [#allocation6], %s222_s12, %s222_s12, %s223_s13  }
  0x19   :  { %215 = dma.done.wait [#allocation3], 128  }
  0x1a   :  { %216 = vsyncadd [#allocation3], 4294967168 }
  0x1b   :  { %217 = dma.done.wait [#allocation6], 128  }
  0x1c   :  { %218 = vsyncadd [#allocation6], 4294967168  ;;  %v225_v0 = vmov 0.0   ;;  %vm226_vm0 = vmmov 0   ;;  %v153_v1 = vld [vmem:[#allocation5] sm:$0xff]   ;;  %v154_v2 = vld [vmem:[#allocation2] sm:$0xff]  }
  0x1d   :  { %140 = vmatprep.subr.bf16.mxu0 %v225_v0  ;;  %142 = vmatprep.mubr.msk.bf16.mxu0 %vm226_vm0, %v225_v0  ;;  %vm56_vm1 = vcmask 130048   ;;  %s227_s0 = smov [#allocation7]   ;;  %vm115_vm2 = vcmask 1041409  }
  0x1e   :  { %141 = vmatpush3.bf16.msra.mxu0 %v153_v1  ;;  %s125_s1 = sshll.u32 %s227_s0, 4  ;;  %s126_s1 = int_to_ptr.vmem [resolvable:$true] %s125_s1 }
  0x1f   :  { %s195_s21 = scalar_lea.vmem %s126_s1, 32  ;;  %p200_p11 = scmp.lt.s32.totalorder %s126_s1, %s126_s1 }
  0x20   :  { %p196_p10 = scmp.ne.s32.totalorder %s126_s1, %s195_s21  ;;  %p201_p12 = scmp.lt.s32.totalorder %s195_s21, %s195_s21 }
  0x21   :  { %143 = vmatmul.mubr.msk.bf16.vlgmr.msra.gmra.mxu0 %vm56_vm1, %v154_v2 }
  0x22   :  { %p202_p13 = por %p201_p12, %p200_p11 }
  0x24   :  { %p203_p0 = pnand %p202_p13, %p196_p10 }
  0xe1   :  { %v94_v3 = vpop.f32.mrf.mxu0 }
  0xe2   :  { %v101_v4 = vrot.slane %v94_v3, 4 }
  0xe3   :  { %v144_v5 = vpop.f32.mrf.mxu0 }
  0xe4   :  { %v102_v6 = vmax.f32 %v94_v3, %v101_v4 }
  0xe5   :  { %v97_v7 = vpop.f32.mrf.mxu0 }
  0xe6   :  { %v103_v8 = vrot.slane %v102_v6, 2  ;;  %v107_v9 = vrot.slane %v97_v7, 4 }
  0xe7   :  { %v145_v10 = vpop.f32.mrf.mxu0 }
  0xe8   :  { %v104_v11 = vmax.f32 %v102_v6, %v103_v8  ;;  %v108_v12 = vmax.f32 %v97_v7, %v107_v9 }
  0xea   :  { %v109_v13 = vrot.slane %v108_v12, 2  ;;  %v105_v14 = vrot.slane %v104_v11, 1 }
  0xec   :  { %v110_v15 = vmax.f32 %v108_v12, %v109_v13  ;;  %v106_v17 = vmax.f32 %v104_v11, %v105_v14 }
  0xee   :  { %v111_v16 = vrot.slane %v110_v15, 1 }
  0xf0   :  { %v112_v18 = vmax.f32 %v110_v15, %v111_v16 }
  0xf2   :  { %v116_v19 = vsel %vm115_vm2, %v112_v18, %v106_v17 }
  0xf3   :  { %118 = vst [vmem:[#allocation7] sm:$0x3] %v116_v19 }
  0xf4   :  { %206 = shalt.err (!%p203_p0)
}
  0xf5   :  { %128 = dma.vmem_to_hbm [thread:$0]  %s126_s1, 32, %s254_s2, [#allocation4]  }
  0xf6   :  { %219 = dma.done.wait [#allocation4], 32  }
  0xf7   :  { %220 = vsyncadd [#allocation4], 4294967264 }
  0xf8   :  { %132 = vsyncpa [#allocation3], 1 }
  0xf9   :  { %133 = vsyncpa [#allocation6], 1 }
  0xfa   :  { %134 = vsyncpa [#allocation4], 1 }

</bundles_post_ra>
